<compile_context>
chip_gen: v6e
topology: v6e:2x2x1
jax: 0.10.0
libtpu: 0.0.40
codegen_flags: <defaults>
</compile_context>

<pallas_src>
import jax
import jax.numpy as jnp
from jax.experimental import pallas as pl
from jax.experimental.pallas import tpu as pltpu


def _cdiv(a, b):
    return (a + b - 1) // b


def _round_up(a, b):
    return _cdiv(a, b) * b


def mlp_kernel(x_ref, w1_ref, b1_ref, w2_ref, b2_ref, o_ref):
    # Layer 1 on the MXU: contract the feature dim of both operands,
    #   (H, F) x (TB, F) -> (H, TB); the batch stays on the lane axis.
    h = jax.lax.dot_general(
        w1_ref[...], x_ref[...],
        dimension_numbers=(((1,), (1,)), ((), ())),
        preferred_element_type=jnp.float32,
    )
    # Bias broadcast over lanes + tanh (EUP). Hidden padded only to 104 rows,
    # so no EUP/VPU work is wasted on dead sublanes.
    h = jnp.tanh(h + b1_ref[...])
    # Layer 2: N=1 matmul replaced by VPU multiply + sublane (XLU) reduce.
    # Result is (1, TB): batch on lanes -> lane-dense store.
    o = jnp.sum(h * w2_ref[...], axis=0, keepdims=True) + b2_ref[0, 0]
    o_ref[...] = o.astype(o_ref.dtype)


def mlp_forward(x, w1, b1, w2, b2, *, block_b=8192):
    """Forward pass of the PyTorch module.

    x : (B, 12) f32
    w1: (100, 12), b1: (100,)   -- nn.Linear(12, 100) layout
    w2: (1, 100),  b2: (1,)     -- nn.Linear(100, 1) layout
    returns (B, 1) f32
    """
    B, F = x.shape
    dt = x.dtype
    H = w1.shape[0]
    Hp = _round_up(H, 8)  # 100 -> 104 (13 sublanes); zero rows keep math exact

    # --- kernel-layout parameters (tiny; prep cost is negligible) ---
    w1_p = jnp.zeros((Hp, F), dt).at[:H, :].set(w1)      # (104, 12)
    b1_p = jnp.zeros((Hp, 1), dt).at[:H, 0].set(b1)       # (104, 1)
    w2_p = jnp.zeros((Hp, 1), dt).at[:H, 0].set(w2[0])    # (104, 1)
    b2_s = b2.reshape(1, 1)                               # scalar -> SMEM

    # --- batch tiling: lane-aligned tile, >=2 grid steps when B allows (v7x megacore) ---
    tb = min(block_b, _round_up(B, 128))
    nb = _cdiv(B, tb)
    if nb == 1 and B > 128:
        tb = _round_up(_cdiv(B, 2), 128)
        nb = _cdiv(B, tb)

    out = pl.pallas_call(
        mlp_kernel,
        out_shape=jax.ShapeDtypeStruct((1, B), dt),
        grid=(nb,),
        in_specs=[
            pl.BlockSpec((tb, F), lambda i: (i, 0)),        # x: streamed / double-buffered
            pl.BlockSpec((Hp, F), lambda i: (0, 0)),        # w1: resident
            pl.BlockSpec((Hp, 1), lambda i: (0, 0)),        # b1 column: resident
            pl.BlockSpec((Hp, 1), lambda i: (0, 0)),        # w2 column: resident
            pl.BlockSpec(memory_space=pltpu.MemorySpace.SMEM),  # b2 scalar in SMEM
        ],
        out_specs=pl.BlockSpec((1, tb), lambda i: (0, i)),  # lane-dense output row
        compiler_params=pltpu.CompilerParams(
            dimension_semantics=("parallel",),              # v7x: shard batch over both TCs
            vmem_limit_bytes=40 * 1024 * 1024,              # headroom for (104, tb) f32 temps
        ),
    )(x, w1_p, b1_p, w2_p, b2_s)

    return out.reshape(B, 1)


def init_params(key):
    # Match PyTorch nn.Linear init shapes exactly: layer1 (100,12)+(100,), layer2 (1,100)+(1,)
    k1, k2, k3, k4 = jax.random.split(key, 4)
    bound1 = 1.0 / (12.0 ** 0.5)
    bound2 = 1.0 / (100.0 ** 0.5)
    w1 = jax.random.uniform(k1, (100, 12), jnp.float32, -bound1, bound1)
    b1 = jax.random.uniform(k2, (100,), jnp.float32, -bound1, bound1)
    w2 = jax.random.uniform(k3, (1, 100), jnp.float32, -bound2, bound2)
    b2 = jax.random.uniform(k4, (1,), jnp.float32, -bound2, bound2)
    return w1, b1, w2, b2


if __name__ == "__main__":
    key = jax.random.PRNGKey(0)
    kx, kp = jax.random.split(key)
    w1, b1, w2, b2 = init_params(kp)

    fwd = jax.jit(mlp_forward)

    # Small case (module scale) + a larger case exercising a multi-step grid and the
    # masked boundary block (3000 is not a multiple of the 1536 tile it gets).
    for B in (8, 3000):
        x = jax.random.normal(jax.random.fold_in(kx, B), (B, 12), jnp.float32)
        out = jax.block_until_ready(fwd(x, w1, b1, w2, b2))

        with jax.default_matmul_precision("highest"):
            ref = jnp.tanh(x @ w1.T + b1) @ w2.T + b2

        assert out.shape == (B, 1)
        assert jnp.allclose(out, ref, atol=1e-4, rtol=1e-4), float(jnp.max(jnp.abs(out - ref)))

    print("KERNEL_OK")
</pallas_src>

<mosaic_0001>
module attributes {stable_mosaic.version = 11 : i64} {
  func.func @mlp_kernel(%arg0: i32, %arg1: memref<128x12xf32, #tpu.memory_space<vmem>>, %arg2: memref<104x12xf32, #tpu.memory_space<vmem>>, %arg3: memref<104x1xf32, #tpu.memory_space<vmem>>, %arg4: memref<104x1xf32, #tpu.memory_space<vmem>>, %arg5: memref<1x1xf32, #tpu.memory_space<smem>>, %arg6: memref<1x128xf32, #tpu.memory_space<vmem>>) attributes {dimension_semantics = [#tpu.dimension_semantics<parallel>], iteration_bounds = array<i64: 1>, scalar_prefetch = 0 : i64, scratch_operands = 0 : i64, tpu.core_type = #tpu.core_type<tc>, window_params = [{transform_indices = @transform_0, window_bounds = array<i64: 128, 12>}, {pipeline_mode = #tpu.pipeline_mode<synchronous>, transform_indices = @transform_1, window_bounds = array<i64: 104, 12>}, {pipeline_mode = #tpu.pipeline_mode<synchronous>, transform_indices = @transform_2, window_bounds = array<i64: 104, 1>}, {pipeline_mode = #tpu.pipeline_mode<synchronous>, transform_indices = @transform_3, window_bounds = array<i64: 104, 1>}, {transform_indices = @transform_4, window_bounds = array<i64: 1, 1>}, {transform_indices = @transform_5, window_bounds = array<i64: 1, 128>}]} {
    %c0 = arith.constant 0 : index
    %c0_0 = arith.constant 0 : index
    %0 = vector.load %arg2[%c0, %c0_0] : memref<104x12xf32, #tpu.memory_space<vmem>>, vector<104x12xf32>
    %c0_1 = arith.constant 0 : index
    %c0_2 = arith.constant 0 : index
    %1 = vector.load %arg1[%c0_1, %c0_2] : memref<128x12xf32, #tpu.memory_space<vmem>>, vector<128x12xf32>
    %cst = arith.constant dense<0.000000e+00> : vector<104x128xf32>
    %2 = tpu.matmul %0, %1, %cst {dimension_numbers = #tpu.dot_dimension_numbers<[1], [1], [0], [0], [0, 0, 1, 0], [], []>} : vector<104x12xf32>, vector<128x12xf32>, vector<104x128xf32> -> vector<104x128xf32>
    %c0_3 = arith.constant 0 : index
    %c0_4 = arith.constant 0 : index
    %3 = vector.load %arg3[%c0_3, %c0_4] : memref<104x1xf32, #tpu.memory_space<vmem>>, vector<104x1xf32>
    %4 = vector.broadcast %3 : vector<104x1xf32> to vector<104x128xf32>
    %5 = arith.addf %2, %4 : vector<104x128xf32>
    %6 = math.tanh %5 : vector<104x128xf32>
    %c0_5 = arith.constant 0 : index
    %c0_6 = arith.constant 0 : index
    %7 = vector.load %arg4[%c0_5, %c0_6] : memref<104x1xf32, #tpu.memory_space<vmem>>, vector<104x1xf32>
    %8 = vector.broadcast %7 : vector<104x1xf32> to vector<104x128xf32>
    %9 = arith.mulf %6, %8 : vector<104x128xf32>
    %cst_7 = arith.constant dense<0.000000e+00> : vector<128xf32>
    %10 = vector.multi_reduction <add>, %9, %cst_7 [0] : vector<104x128xf32> to vector<128xf32>
    %11 = vector.shape_cast %10 : vector<128xf32> to vector<1x128xf32>
    %c0_8 = arith.constant 0 : index
    %c0_9 = arith.constant 0 : index
    %12 = memref.load %arg5[%c0_8, %c0_9] : memref<1x1xf32, #tpu.memory_space<smem>>
    %13 = vector.broadcast %12 : f32 to vector<1x128xf32>
    %14 = arith.addf %11, %13 : vector<1x128xf32>
    %c0_10 = arith.constant 0 : index
    %c0_11 = arith.constant 0 : index
    %15 = vector.load %arg6[%c0_10, %c0_11] : memref<1x128xf32, #tpu.memory_space<vmem>>, vector<1x128xf32>
    tpu.vector_store %arg6[%c0_10, %c0_11], %14 {strides = array<i32>} : memref<1x128xf32, #tpu.memory_space<vmem>>, vector<1x128xf32>,
    return
  }
  func.func @transform_0(%arg0: i32) -> (i32, i32) {
    %c0_i32 = arith.constant 0 : i32
    %c0_i32_0 = arith.constant 0 : i32
    return %arg0, %c0_i32 : i32, i32
  }
  func.func @transform_1(%arg0: i32) -> (i32, i32) {
    %c0_i32 = arith.constant 0 : i32
    %c0_i32_0 = arith.constant 0 : i32
    %c0_i32_1 = arith.constant 0 : i32
    return %c0_i32, %c0_i32_0 : i32, i32
  }
  func.func @transform_2(%arg0: i32) -> (i32, i32) {
    %c0_i32 = arith.constant 0 : i32
    %c0_i32_0 = arith.constant 0 : i32
    %c0_i32_1 = arith.constant 0 : i32
    return %c0_i32, %c0_i32_0 : i32, i32
  }
  func.func @transform_3(%arg0: i32) -> (i32, i32) {
    %c0_i32 = arith.constant 0 : i32
    %c0_i32_0 = arith.constant 0 : i32
    %c0_i32_1 = arith.constant 0 : i32
    return %c0_i32, %c0_i32_0 : i32, i32
  }
  func.func @transform_4(%arg0: i32) -> (i32, i32) {
    %c0_i32 = arith.constant 0 : i32
    %c0_i32_0 = arith.constant 0 : i32
    %c0_i32_1 = arith.constant 0 : i32
    return %c0_i32, %c0_i32_0 : i32, i32
  }
  func.func @transform_5(%arg0: i32) -> (i32, i32) {
    %c0_i32 = arith.constant 0 : i32
    %c0_i32_0 = arith.constant 0 : i32
    return %c0_i32, %arg0 : i32, i32
  }
}

</mosaic_0001>

<bundles_post_ra>
// kernel: mlp_forward.1
= control target key start
LH: loop header
LB: loop body
LE: loop exit
PB: predicated region body
PF: predicated region fallthrough
CT: control target
= control target key end

     0   :  { %vm129_vm0 = vcmask 97280   ;;  %v702_v1 = vmov 0.0   ;;  %vm703_vm1 = vmmov 0   ;;  %v704_v3 = vmov 0   ;;  %s1010_s0 = inlined_call_operand.vmem [shape: f32[8,12], index: 0, kind: input, shape index: {}]   ;;  %s1011_s1 = inlined_call_operand.vmem [shape: f32[104,12], index: 1, kind: input, shape index: {}]   ;;  %s1012_s2 = inlined_call_operand.vmem [shape: f32[104,1], index: 2, kind: input, shape index: {}]   ;;  %s1013_s3 = inlined_call_operand.vmem [shape: f32[104,1], index: 3, kind: input, shape index: {}]   ;;  %s1014_s4 = inlined_call_operand.<no memory space> [shape: f32[1,1], index: 4, kind: input, shape index: {}]   ;;  %s1015_s5 = inlined_call_operand.hbm [shape: f32[1,8], index: 5, kind: output, shape index: {}]  }
   0x1   :  { %v50_v0 = vld [vmem:[%s1010_s0 + $0x78] sm:$0xff]  ;;  %545 = vmatprep.subr.mxu0 %v702_v1  ;;  %616 = vmatprep.subr.mxu1 %v702_v1  ;;  %v49_v2 = vld [vmem:[%s1010_s0 + $0x70] sm:$0xff]  ;;  %v48_v4 = vld [vmem:[%s1010_s0 + $0x68] sm:$0xff] }
   0x2   :  { %546 = vmatpush3.xpose.msk.msra.mxu0 %vm129_vm0, %v50_v0  ;;  %632 = vmatpush3.xpose.msk.msra.mxu1 %vm129_vm0, %v50_v0  ;;  %v51_v5 = vld [vmem:[%s1012_s2] sm:$0xff]  ;;  %v53_v6 = vld [vmem:[%s1012_s2 + $0x10] sm:$0xff]  ;;  %v52_v8 = vld [vmem:[%s1012_s2 + $0x8] sm:$0xff] }
   0x3   :  { %547 = vmatprep.subr.mxu0 %v702_v1  ;;  %617 = vmatprep.subr.mxu1 %v702_v1  ;;  %v47_v7 = vld [vmem:[%s1010_s0 + $0x60] sm:$0xff]  ;;  %v54_v9 = vld [vmem:[%s1012_s2 + $0x18] sm:$0xff]  ;;  %v56_v12 = vld [vmem:[%s1012_s2 + $0x28] sm:$0xff] }
   0x4   :  { %577 = vmatprep.mubr.msk.f32.mxu0 %vm703_vm1, %v702_v1  ;;  %598 = vmatprep.mubr.msk.f32.mxu1 %vm703_vm1, %v702_v1  ;;  %v46_v10 = vld [vmem:[%s1010_s0 + $0x58] sm:$0xff]  ;;  %v55_v11 = vld [vmem:[%s1012_s2 + $0x20] sm:$0xff] }
   0x5   :  { %652 = vset.pattern.permute.xlu0 %v704_v3  ;;  %653 = vset.pattern.permute.xlu1 %v704_v3 }
   0x6   :  { %548 = vmatpush3.xpose.msk.msra.mxu0 %vm129_vm0, %v49_v2  ;;  %633 = vmatpush3.xpose.msk.msra.mxu1 %vm129_vm0, %v49_v2 }
   0x7   :  { %549 = vmatprep.subr.mxu0 %v702_v1  ;;  %618 = vmatprep.subr.mxu1 %v702_v1 }
   0x8   :  { %66 = vperm.xlu0 %652, %v51_v5   ;;  %76 = vperm.xlu1 %653, %v53_v6  }
   0xa   :  { %550 = vmatpush3.xpose.msk.msra.mxu0 %vm129_vm0, %v48_v4  ;;  %634 = vmatpush3.xpose.msk.msra.mxu1 %vm129_vm0, %v48_v4 }
   0xb   :  { %551 = vmatprep.subr.mxu0 %v702_v1  ;;  %619 = vmatprep.subr.mxu1 %v702_v1 }
   0xc   :  { %71 = vperm.xlu0 %652, %v52_v8   ;;  %81 = vperm.xlu1 %653, %v54_v9  }
   0xe   :  { %552 = vmatpush3.xpose.msk.msra.mxu0 %vm129_vm0, %v47_v7  ;;  %635 = vmatpush3.xpose.msk.msra.mxu1 %vm129_vm0, %v47_v7 }
   0xf   :  { %553 = vmatprep.subr.mxu0 %v702_v1  ;;  %620 = vmatprep.subr.mxu1 %v702_v1 }
  0x12   :  { %554 = vmatpush3.xpose.msk.msra.mxu0 %vm129_vm0, %v46_v10  ;;  %636 = vmatpush3.xpose.msk.msra.mxu1 %vm129_vm0, %v46_v10 }
  0x13   :  { %11 = vsyncpa [#allocation4], 0  ;;  %555 = vmatprep.subr.mxu0 %v702_v1  ;;  %621 = vmatprep.subr.mxu1 %v702_v1  ;;  %v45_v13 = vld [vmem:[%s1010_s0 + $0x50] sm:$0xff]  ;;  %v58_v15 = vld [vmem:[%s1012_s2 + $0x38] sm:$0xff]  ;;  %s705_s25 = smov [#allocation3]  }
  0x14   :  { %86 = vperm.xlu0 %652, %v55_v11   ;;  %91 = vperm.xlu1 %653, %v56_v12   ;;  %v57_v14 = vld [vmem:[%s1012_s2 + $0x30] sm:$0xff]  ;;  %v44_v16 = vld [vmem:[%s1010_s0 + $0x48] sm:$0xff]  ;;  %v59_v17 = vld [vmem:[%s1012_s2 + $0x40] sm:$0xff]  ;;  %s479_s26 = sshll.u32 %s705_s25, 4  ;;  %s480_s26 = int_to_ptr.vmem [resolvable:$true] %s479_s26 }
  0x15   :  { %v60_v18 = vld [vmem:[%s1012_s2 + $0x48] sm:$0xff]  ;;  %v43_v19 = vld [vmem:[%s1010_s0 + $0x40] sm:$0xff]  ;;  %v42_v22 = vld [vmem:[%s1010_s0 + $0x38] sm:$0xff]  ;;  %s684_s27 = scalar_lea.vmem %s480_s26, 32  ;;  %p685_p1 = scmp.lt.s32.totalorder %s480_s26, %s480_s26 }
  0x16   :  { %556 = vmatpush3.xpose.msk.msra.mxu0 %vm129_vm0, %v45_v13  ;;  %637 = vmatpush3.xpose.msk.msra.mxu1 %vm129_vm0, %v45_v13  ;;  %v360_v20 = vld [vmem:[%s1013_s3] sm:$0xff]  ;;  %v361_v21 = vld [vmem:[%s1013_s3 + $0x8] sm:$0xff]  ;;  %v61_v23 = vld [vmem:[%s1012_s2 + $0x50] sm:$0xff] }
  0x17   :  { %557 = vmatprep.subr.mxu0 %v702_v1  ;;  %622 = vmatprep.subr.mxu1 %v702_v1  ;;  %v362_v24 = vld [vmem:[%s1013_s3 + $0x10] sm:$0xff]  ;;  %v62_v26 = vld [vmem:[%s1012_s2 + $0x58] sm:$0xff]  ;;  %v40_v28 = vld [vmem:[%s1010_s0 + $0x28] sm:$0xff] }
  0x18   :  { %96 = vperm.xlu0 %652, %v57_v14   ;;  %101 = vperm.xlu1 %653, %v58_v15   ;;  %v41_v25 = vld [vmem:[%s1010_s0 + $0x30] sm:$0xff]  ;;  %v363_v27 = vld [vmem:[%s1013_s3 + $0x18] sm:$0xff]  ;;  %v63_v29 = vld [vmem:[%s1012_s2 + $0x60] sm:$0xff] }
  0x19   :  { %v364_v30 = vld [vmem:[%s1013_s3 + $0x20] sm:$0xff]  ;;  %v365_v32 = vld [vmem:[%s1013_s3 + $0x28] sm:$0xff]  ;;  %v366_v33 = vld [vmem:[%s1013_s3 + $0x30] sm:$0xff] }
  0x1a   :  { %558 = vmatpush3.xpose.msk.msra.mxu0 %vm129_vm0, %v44_v16  ;;  %638 = vmatpush3.xpose.msk.msra.mxu1 %vm129_vm0, %v44_v16  ;;  %v39_v31 = vld [vmem:[%s1010_s0 + $0x20] sm:$0xff]  ;;  %v38_v34 = vld [vmem:[%s1010_s0 + $0x18] sm:$0xff]  ;;  %v37_v37 = vld [vmem:[%s1010_s0 + $0x10] sm:$0xff] }
  0x1b   :  { %559 = vmatprep.subr.mxu0 %v702_v1  ;;  %623 = vmatprep.subr.mxu1 %v702_v1  ;;  %v367_v35 = vld [vmem:[%s1013_s3 + $0x38] sm:$0xff]  ;;  %v368_v36 = vld [vmem:[%s1013_s3 + $0x40] sm:$0xff]  ;;  %v369_v38 = vld [vmem:[%s1013_s3 + $0x48] sm:$0xff] }
  0x1c   :  { %106 = vperm.xlu0 %652, %v59_v17   ;;  %111 = vperm.xlu1 %653, %v60_v18   ;;  %v370_v39 = vld [vmem:[%s1013_s3 + $0x50] sm:$0xff]  ;;  %v36_v40 = vld [vmem:[%s1010_s0 + $0x8] sm:$0xff]  ;;  %v371_v41 = vld [vmem:[%s1013_s3 + $0x58] sm:$0xff] }
  0x1d   :  { %v372_v42 = vld [vmem:[%s1013_s3 + $0x60] sm:$0xff]  ;;  %v29_v45 = vld [vmem:[%s1011_s1 + $0x38] sm:$0xff]  ;;  %v23_v46 = vld [vmem:[%s1011_s1 + $0x8] sm:$0xff]  ;;  %s680_s3 = scalar_lea.vmem %s480_s26, 16 }
  0x1e   :  { %560 = vmatpush3.xpose.msk.msra.mxu0 %vm129_vm0, %v43_v19  ;;  %639 = vmatpush3.xpose.msk.msra.mxu1 %vm129_vm0, %v43_v19  ;;  %v35_v43 = vld [vmem:[%s1010_s0] sm:$0xff]  ;;  %v24_v48 = vld [vmem:[%s1011_s1 + $0x10] sm:$0xff]  ;;  %v31_v49 = vld [vmem:[%s1011_s1 + $0x48] sm:$0xff]  ;;  %p681_p0 = scmp.ne.s32.totalorder %s480_s26, %s680_s3  ;;  %p686_p2 = scmp.lt.s32.totalorder %s684_s27, %s680_s3 }
  0x1f   :  { %561 = vmatprep.subr.mxu0 %v702_v1  ;;  %624 = vmatprep.subr.mxu1 %v702_v1  ;;  %v22_v44 = vld [vmem:[%s1011_s1] sm:$0xff]  ;;  %v25_v50 = vld [vmem:[%s1011_s1 + $0x18] sm:$0xff]  ;;  %v32_v51 = vld [vmem:[%s1011_s1 + $0x50] sm:$0xff] }
  0x20   :  { %375 = vperm.xlu0 %652, %v360_v20   ;;  %380 = vperm.xlu1 %653, %v361_v21   ;;  %v30_v47 = vld [vmem:[%s1011_s1 + $0x40] sm:$0xff]  ;;  %v33_v53 = vld [vmem:[%s1011_s1 + $0x58] sm:$0xff]  ;;  %v27_v54 = vld [vmem:[%s1011_s1 + $0x28] sm:$0xff]  ;;  %p687_p3 = por %p686_p2, %p685_p1 }
  0x21   :  { %v26_v52 = vld [vmem:[%s1011_s1 + $0x20] sm:$0xff]  ;;  %v28_v56 = vld [vmem:[%s1011_s1 + $0x30] sm:$0xff] }
  0x22   :  { %562 = vmatpush3.xpose.msk.msra.mxu0 %vm129_vm0, %v42_v22  ;;  %640 = vmatpush3.xpose.msk.msra.mxu1 %vm129_vm0, %v42_v22  ;;  %v34_v55 = vld [vmem:[%s1011_s1 + $0x60] sm:$0xff]  ;;  %p688_p4 = pnand %p687_p3, %p681_p0 }
  0x23   :  { %563 = vmatprep.subr.mxu0 %v702_v1  ;;  %625 = vmatprep.subr.mxu1 %v702_v1 }
  0x24   :  { %116 = vperm.xlu0 %652, %v61_v23   ;;  %385 = vperm.xlu1 %653, %v362_v24  }
  0x26   :  { %564 = vmatpush3.xpose.msk.msra.mxu0 %vm129_vm0, %v41_v25  ;;  %641 = vmatpush3.xpose.msk.msra.mxu1 %vm129_vm0, %v41_v25 }
  0x27   :  { %565 = vmatprep.subr.mxu0 %v702_v1  ;;  %626 = vmatprep.subr.mxu1 %v702_v1 }
  0x28   :  { %121 = vperm.xlu0 %652, %v62_v26   ;;  %390 = vperm.xlu1 %653, %v363_v27  }
  0x2a   :  { %566 = vmatpush3.xpose.msk.msra.mxu0 %vm129_vm0, %v40_v28  ;;  %642 = vmatpush3.xpose.msk.msra.mxu1 %vm129_vm0, %v40_v28 }
  0x2b   :  { %567 = vmatprep.subr.mxu0 %v702_v1  ;;  %627 = vmatprep.subr.mxu1 %v702_v1 }
  0x2c   :  { %126 = vperm.xlu0 %652, %v63_v29   ;;  %395 = vperm.xlu1 %653, %v364_v30  }
  0x2e   :  { %568 = vmatpush3.xpose.msk.msra.mxu0 %vm129_vm0, %v39_v31  ;;  %643 = vmatpush3.xpose.msk.msra.mxu1 %vm129_vm0, %v39_v31 }
  0x2f   :  { %569 = vmatprep.subr.mxu0 %v702_v1  ;;  %628 = vmatprep.subr.mxu1 %v702_v1 }
  0x30   :  { %400 = vperm.xlu0 %652, %v365_v32   ;;  %405 = vperm.xlu1 %653, %v366_v33  }
  0x32   :  { %570 = vmatpush3.xpose.msk.msra.mxu0 %vm129_vm0, %v38_v34  ;;  %644 = vmatpush3.xpose.msk.msra.mxu1 %vm129_vm0, %v38_v34 }
  0x33   :  { %571 = vmatprep.subr.mxu0 %v702_v1  ;;  %629 = vmatprep.subr.mxu1 %v702_v1 }
  0x34   :  { %410 = vperm.xlu0 %652, %v367_v35   ;;  %415 = vperm.xlu1 %653, %v368_v36  }
  0x36   :  { %572 = vmatpush3.xpose.msk.msra.mxu0 %vm129_vm0, %v37_v37  ;;  %645 = vmatpush3.xpose.msk.msra.mxu1 %vm129_vm0, %v37_v37 }
  0x37   :  { %573 = vmatprep.subr.mxu0 %v702_v1  ;;  %630 = vmatprep.subr.mxu1 %v702_v1 }
  0x38   :  { %420 = vperm.xlu0 %652, %v369_v38   ;;  %425 = vperm.xlu1 %653, %v370_v39  }
  0x3a   :  { %574 = vmatpush3.xpose.msk.msra.mxu0 %vm129_vm0, %v36_v40  ;;  %646 = vmatpush3.xpose.msk.msra.mxu1 %vm129_vm0, %v36_v40 }
  0x3b   :  { %575 = vmatprep.subr.mxu0 %v702_v1  ;;  %631 = vmatprep.subr.mxu1 %v702_v1 }
  0x3c   :  { %430 = vperm.xlu0 %652, %v371_v41   ;;  %435 = vperm.xlu1 %653, %v372_v42  }
  0x3e   :  { %576 = vmatpush3.xpose.msk.msra.mxu0 %vm129_vm0, %v35_v43  ;;  %647 = vmatpush3.xpose.msk.msra.mxu1 %vm129_vm0, %v35_v43 }
  0x41   :  { %578 = vmatmul.mubr.msk.f32.vlgmr.msra.gmra.mxu0 %vm129_vm0, %v22_v44  ;;  %599 = vmatmul.mubr.msk.f32.vlgmr.msra.gmra.mxu1 %vm129_vm0, %v29_v45 }
  0x42   :  { %580 = vmatprep.mubr.msk.f32.mxu0 %vm703_vm1, %v702_v1  ;;  %601 = vmatprep.mubr.msk.f32.mxu1 %vm703_vm1, %v702_v1 }
  0x45   :  { %581 = vmatmul.mubr.msk.f32.gmra.mxu0 %vm129_vm0, %v23_v46  ;;  %602 = vmatmul.mubr.msk.f32.gmra.mxu1 %vm129_vm0, %v30_v47 }
  0x46   :  { %583 = vmatprep.mubr.msk.f32.mxu0 %vm703_vm1, %v702_v1  ;;  %604 = vmatprep.mubr.msk.f32.mxu1 %vm703_vm1, %v702_v1 }
  0x49   :  { %584 = vmatmul.mubr.msk.f32.gmra.mxu0 %vm129_vm0, %v24_v48  ;;  %605 = vmatmul.mubr.msk.f32.gmra.mxu1 %vm129_vm0, %v31_v49 }
  0x4a   :  { %586 = vmatprep.mubr.msk.f32.mxu0 %vm703_vm1, %v702_v1  ;;  %607 = vmatprep.mubr.msk.f32.mxu1 %vm703_vm1, %v702_v1 }
  0x4d   :  { %587 = vmatmul.mubr.msk.f32.gmra.mxu0 %vm129_vm0, %v25_v50  ;;  %608 = vmatmul.mubr.msk.f32.gmra.mxu1 %vm129_vm0, %v32_v51 }
  0x4e   :  { %589 = vmatprep.mubr.msk.f32.mxu0 %vm703_vm1, %v702_v1  ;;  %610 = vmatprep.mubr.msk.f32.mxu1 %vm703_vm1, %v702_v1 }
  0x51   :  { %590 = vmatmul.mubr.msk.f32.gmra.mxu0 %vm129_vm0, %v26_v52  ;;  %611 = vmatmul.mubr.msk.f32.gmra.mxu1 %vm129_vm0, %v33_v53 }
  0x52   :  { %592 = vmatprep.mubr.msk.f32.mxu0 %vm703_vm1, %v702_v1  ;;  %613 = vmatprep.mubr.msk.f32.mxu1 %vm703_vm1, %v702_v1 }
  0x55   :  { %593 = vmatmul.mubr.msk.f32.gmra.mxu0 %vm129_vm0, %v27_v54  ;;  %614 = vmatmul.mubr.msk.f32.gmra.mxu1 %vm129_vm0, %v34_v55 }
  0x56   :  { %595 = vmatprep.mubr.msk.f32.mxu0 %vm703_vm1, %v702_v1 }
  0x59   :  { %596 = vmatmul.mubr.msk.f32.gmra.mxu0 %vm129_vm0, %v28_v56 }
  0x83   :  { %v67_v57 = vpop.permute.xlu0 %66  ;;  %v77_v58 = vpop.permute.xlu1 %76 }
  0x87   :  { %v72_v59 = vpop.permute.xlu0 %71  ;;  %v82_v60 = vpop.permute.xlu1 %81 }
  0x8f   :  { %v87_v61 = vpop.permute.xlu0 %86  ;;  %v92_v62 = vpop.permute.xlu1 %91 }
  0x93   :  { %v97_v63 = vpop.permute.xlu0 %96  ;;  %v102_v0 = vpop.permute.xlu1 %101 }
  0x97   :  { %v107_v4 = vpop.permute.xlu0 %106  ;;  %v112_v1 = vpop.permute.xlu1 %111 }
  0x9b   :  { %v376_v11 = vpop.permute.xlu0 %375  ;;  %v381_v14 = vpop.permute.xlu1 %380 }
  0x9f   :  { %v117_v22 = vpop.permute.xlu0 %116  ;;  %v386_v26 = vpop.permute.xlu1 %385 }
  0xa3   :  { %v122_v32 = vpop.permute.xlu0 %121  ;;  %v391_v35 = vpop.permute.xlu1 %390 }
  0xa7   :  { %v127_v44 = vpop.permute.xlu0 %126  ;;  %v396_v49 = vpop.permute.xlu1 %395 }
 0x101   :  { %v283_v2 = vpop.f32.mrf.mxu0  ;;  %v318_v3 = vpop.f32.mrf.mxu1 }
 0x102   :  { %v284_v16 = vadd.f32 %v283_v2, %v67_v57  ;;  %v319_v37 = vadd.f32 %v318_v3, %v102_v0  ;;  %v401_v57 = vpop.permute.xlu0 %400 }
 0x103   :  { %v579_v5 = vpop.f32.mrf.mxu0  ;;  %v600_v6 = vpop.f32.mrf.mxu1 }
 0x105   :  { %v288_v7 = vpop.f32.mrf.mxu0  ;;  %v323_v8 = vpop.f32.mrf.mxu1 }
 0x106   :  { %v289_v15 = vadd.f32 %v288_v7, %v72_v59  ;;  %v324_v41 = vadd.f32 %v323_v8, %v107_v4  ;;  %v411_v4 = vpop.permute.xlu0 %410 }
 0x107   :  { %v582_v9 = vpop.f32.mrf.mxu0  ;;  %v603_v10 = vpop.f32.mrf.mxu1 }
 0x108   :  { %654 = vtanh.f32 %v289_v15 }
 0x109   :  { %v293_v12 = vpop.f32.mrf.mxu0  ;;  %v328_v13 = vpop.f32.mrf.mxu1  ;;  %656 = vtanh.f32 %v284_v16 }
 0x10a   :  { %v294_v19 = vadd.f32 %v293_v12, %v77_v58  ;;  %v329_v47 = vadd.f32 %v328_v13, %v112_v1 }
 0x10b   :  { %v585_v17 = vpop.f32.mrf.mxu0  ;;  %v606_v18 = vpop.f32.mrf.mxu1 }
 0x10c   :  { %658 = vtanh.f32 %v294_v19 }
 0x10d   :  { %v298_v20 = vpop.f32.mrf.mxu0  ;;  %v333_v21 = vpop.f32.mrf.mxu1 }
 0x10e   :  { %v299_v23 = vadd.f32 %v298_v20, %v82_v60  ;;  %v334_v51 = vadd.f32 %v333_v21, %v117_v22 }
 0x10f   :  { %v588_v24 = vpop.f32.mrf.mxu0  ;;  %v609_v25 = vpop.f32.mrf.mxu1 }
 0x110   :  { %660 = vtanh.f32 %v299_v23 }
 0x111   :  { %v303_v27 = vpop.f32.mrf.mxu0  ;;  %v338_v28 = vpop.f32.mrf.mxu1 }
 0x112   :  { %v304_v29 = vadd.f32 %v303_v27, %v87_v61  ;;  %v339_v55 = vadd.f32 %v338_v28, %v122_v32  ;;  %v406_v61 = vpop.permute.xlu1 %405 }
 0x113   :  { %v591_v30 = vpop.f32.mrf.mxu0  ;;  %v612_v31 = vpop.f32.mrf.mxu1 }
 0x114   :  { %662 = vtanh.f32 %v304_v29 }
 0x115   :  { %v308_v33 = vpop.f32.mrf.mxu0  ;;  %v343_v34 = vpop.f32.mrf.mxu1 }
 0x116   :  { %v309_v36 = vadd.f32 %v308_v33, %v92_v62  ;;  %v655_v43 = vpop.eup %654  ;;  %v344_v60 = vadd.f32 %v343_v34, %v127_v44  ;;  %v416_v7 = vpop.permute.xlu1 %415 }
 0x117   :  { %v594_v38 = vpop.f32.mrf.mxu0  ;;  %v615_v39 = vpop.f32.mrf.mxu1  ;;  %v439_v50 = vmul.f32 %v655_v43, %v381_v14 }
 0x118   :  { %664 = vtanh.f32 %v309_v36  ;;  %v657_v46 = vpop.eup %656  ;;  %v421_v14 = vpop.permute.xlu0 %420 }
 0x119   :  { %v313_v40 = vpop.f32.mrf.mxu0  ;;  %666 = vtanh.f32 %v319_v37  ;;  %v659_v48 = vpop.eup %658  ;;  %v438_v53 = vmul.f32 %v657_v46, %v376_v11  ;;  %v470_v37 = vstv %s1014_s4 }
 0x11a   :  { %v314_v42 = vadd.f32 %v313_v40, %v97_v63  ;;  %v440_v54 = vmul.f32 %v659_v48, %v386_v26  ;;  %v426_v18 = vpop.permute.xlu1 %425 }
 0x11b   :  { %v597_v45 = vpop.f32.mrf.mxu0  ;;  %v451_v58 = vadd.f32 %v439_v50, %v438_v53 }
 0x11c   :  { %668 = vtanh.f32 %v314_v42  ;;  %v431_v25 = vpop.permute.xlu0 %430 }
 0x11d   :  { %670 = vtanh.f32 %v324_v41  ;;  %v661_v52 = vpop.eup %660  ;;  %v452_v62 = vadd.f32 %v451_v58, %v440_v54 }
 0x11e   :  { %672 = vtanh.f32 %v329_v47  ;;  %v441_v59 = vmul.f32 %v661_v52, %v391_v35  ;;  %v436_v28 = vpop.permute.xlu1 %435 }
 0x11f   :  { %674 = vtanh.f32 %v334_v51 }
 0x120   :  { %676 = vtanh.f32 %v339_v55  ;;  %v453_v2 = vadd.f32 %v452_v62, %v441_v59 }
 0x121   :  { %v663_v56 = vpop.eup %662  ;;  %678 = vtanh.f32 %v344_v60 }
 0x122   :  { %v442_v63 = vmul.f32 %v663_v56, %v396_v49 }
 0x124   :  { %v454_v6 = vadd.f32 %v453_v2, %v442_v63 }
 0x125   :  { %v665_v0 = vpop.eup %664 }
 0x126   :  { %v443_v3 = vmul.f32 %v665_v0, %v401_v57  ;;  %v667_v5 = vpop.eup %666 }
 0x127   :  { %v445_v11 = vmul.f32 %v667_v5, %v411_v4 }
 0x128   :  { %v455_v8 = vadd.f32 %v454_v6, %v443_v3 }
 0x129   :  { %v669_v1 = vpop.eup %668 }
 0x12a   :  { %v444_v9 = vmul.f32 %v669_v1, %v406_v61  ;;  %v671_v10 = vpop.eup %670 }
 0x12b   :  { %v673_v13 = vpop.eup %672  ;;  %v446_v15 = vmul.f32 %v671_v10, %v416_v7 }
 0x12c   :  { %v456_v12 = vadd.f32 %v455_v8, %v444_v9  ;;  %v675_v17 = vpop.eup %674  ;;  %v447_v19 = vmul.f32 %v673_v13, %v421_v14 }
 0x12d   :  { %v677_v21 = vpop.eup %676  ;;  %v448_v22 = vmul.f32 %v675_v17, %v426_v18 }
 0x12e   :  { %v457_v16 = vadd.f32 %v456_v12, %v445_v11  ;;  %v679_v24 = vpop.eup %678  ;;  %v449_v26 = vmul.f32 %v677_v21, %v431_v25 }
 0x12f   :  { %v450_v29 = vmul.f32 %v679_v24, %v436_v28 }
 0x130   :  { %v458_v20 = vadd.f32 %v457_v16, %v446_v15 }
 0x132   :  { %v459_v23 = vadd.f32 %v458_v20, %v447_v19 }
 0x134   :  { %v460_v27 = vadd.f32 %v459_v23, %v448_v22 }
 0x136   :  { %v461_v30 = vadd.f32 %v460_v27, %v449_v26 }
 0x138   :  { %v462_v31 = vadd.f32 %v461_v30, %v450_v29 }
 0x13a   :  { %v463_v32 = vrot.slane %v462_v31, 4 }
 0x13c   :  { %v464_v33 = vadd.f32 %v463_v32, %v462_v31 }
 0x13e   :  { %v465_v34 = vrot.slane %v464_v33, 2 }
 0x140   :  { %v466_v35 = vadd.f32 %v465_v34, %v464_v33 }
 0x142   :  { %v467_v36 = vrot.slane %v466_v35, 1 }
 0x144   :  { %v468_v38 = vadd.f32 %v467_v36, %v466_v35 }
 0x146   :  { %v471_v39 = vadd.f32 %v470_v37, %v468_v38 }
 0x148   :  { %472 = vst [vmem:[#allocation3] sm:$0x1] %v471_v39 }
 0x149   :  { %691 = shalt.err (!%p688_p4)
}
 0x14a   :  { %482 = dma.vmem_to_hbm [thread:$0]  %s480_s26, 16, %s1015_s5, [#allocation4]  }
 0x14b   :  { %700 = dma.done.wait [#allocation4], 16  }
 0x14c   :  { %701 = vsyncadd [#allocation4], 4294967280 }
 0x14d   :  { %486 = vsyncpa [#allocation4], 1 }

</bundles_post_ra>
